<compile_context>
chip_gen: v6e
topology: v6e:2x2x1
jax: 0.10.0
libtpu: 0.0.40
codegen_flags: <defaults>
</compile_context>

<pallas_src>
import math
from functools import partial

import numpy as np
import jax
import jax.numpy as jnp
from jax.experimental import pallas as pl
from jax.experimental.pallas import tpu as pltpu


# ----------------------------------------------------------------------------
# In-kernel 3x3 "same" conv on CHW-flat activations
# ----------------------------------------------------------------------------
def _conv3x3_chw(x, masks_ref, w_ref, b_ref, *, W, relu):
    """x: (Cin, P) f32 value, P = H*W flattened row-major on the lane axis.
    masks_ref: (9, 1, P) f32 ref  -- per-tap validity mask (0 at the border).
    w_ref:     (9, Cout, Cin) bf16 ref -- tap-major weights (tap = ky*3 + kx).
    b_ref:     (Cout, 1) f32 ref.
    returns (Cout, P) f32."""
    P = x.shape[-1]
    cout = w_ref.shape[1]
    acc = jnp.zeros((cout, P), jnp.float32)
    t = 0
    for dy in (-1, 0, 1):
        for dx in (-1, 0, 1):
            off = dy * W + dx                      # flat input offset of tap
            if off == 0:
                xs = x
            else:
                # xs[p] = x[p + off]; wraparound only reaches masked-out taps.
                xs = pltpu.roll(x, shift=(-off) % P, axis=1) * masks_ref[t]
            acc = acc + jnp.dot(w_ref[t], xs.astype(jnp.bfloat16),
                                preferred_element_type=jnp.float32)
            t += 1
    acc = acc + b_ref[...]                          # (Cout,1) broadcast
    if relu:
        acc = jnp.maximum(acc, 0.0)
    return acc


def _single_conv_kernel(x_ref, masks_ref, w_ref, b_ref, o_ref, *, W, relu):
    y = _conv3x3_chw(x_ref[0].astype(jnp.float32), masks_ref, w_ref, b_ref,
                     W=W, relu=relu)
    o_ref[0] = y.astype(o_ref.dtype)


def _chain_kernel(*refs, W, num_block):
    """Fused: head -> num_block ResBlocks -> body-tail (+global skip) -> one
    final conv (first upsample conv, or the tail conv for scale==1).
    refs = (x, masks, w0, b0, w1, b1, ..., out)."""
    x_ref, masks_ref = refs[0], refs[1]
    o_ref = refs[-1]
    wb = refs[2:-1]
    convs = [(wb[2 * i], wb[2 * i + 1]) for i in range(len(wb) // 2)]
    idx = [0]

    def conv(v, relu):
        w_ref, b_ref = convs[idx[0]]
        idx[0] += 1
        return _conv3x3_chw(v, masks_ref, w_ref, b_ref, W=W, relu=relu)

    feat = conv(x_ref[0].astype(jnp.float32), relu=False)     # head
    skip = feat
    for _ in range(num_block):                                 # ResBlocks
        r = conv(feat, relu=True)
        r = conv(r, relu=False)
        feat = feat + r                                        # fused residual
    feat = conv(feat, relu=False) + skip                       # body tail + skip
    while idx[0] < len(convs):                                 # up conv / tail
        feat = conv(feat, relu=False)
    o_ref[0] = feat.astype(o_ref.dtype)


# ----------------------------------------------------------------------------
# Wrappers (build operands / BlockSpecs, NCHW in / NCHW out)
# ----------------------------------------------------------------------------
def _build_masks(H, W):
    P = H * W
    r = np.arange(P) // W
    c = np.arange(P) % W
    m = np.zeros((9, 1, P), np.float32)
    t = 0
    for dy in (-1, 0, 1):
        for dx in (-1, 0, 1):
            m[t, 0] = ((r + dy >= 0) & (r + dy < H) &
                       (c + dx >= 0) & (c + dx < W)).astype(np.float32)
            t += 1
    return jnp.asarray(m)


def _conv_operands(w, b):
    """Torch-layout (Cout, Cin, 3, 3) weight -> tap-major bf16 + f32 bias."""
    cout, cin = w.shape[0], w.shape[1]
    w9 = jnp.transpose(w.reshape(cout, cin, 9), (2, 0, 1)).astype(jnp.bfloat16)
    b2 = b.reshape(cout, 1).astype(jnp.float32)
    specs = [pl.BlockSpec((9, cout, cin), lambda n: (0, 0, 0)),
             pl.BlockSpec((cout, 1), lambda n: (0, 0))]
    return [w9, b2], specs


def conv3x3_nchw(x, w, b, *, relu=False, out_dtype=jnp.float32):
    """Single 3x3 'same' conv as one pallas_call (used after pixel shuffles)."""
    N, C, H, W = x.shape
    P = H * W
    cout = w.shape[0]
    wb_ops, wb_specs = _conv_operands(w, b)
    y = pl.pallas_call(
        partial(_single_conv_kernel, W=W, relu=relu),
        out_shape=jax.ShapeDtypeStruct((N, cout, P), out_dtype),
        grid=(N,),
        in_specs=[pl.BlockSpec((1, C, P), lambda n: (n, 0, 0)),
                  pl.BlockSpec((9, 1, P), lambda n: (0, 0, 0))] + wb_specs,
        out_specs=pl.BlockSpec((1, cout, P), lambda n: (n, 0, 0)),
        compiler_params=pltpu.CompilerParams(
            dimension_semantics=("parallel",)),
    )(x.reshape(N, C, P), _build_masks(H, W), *wb_ops)
    return y.reshape(N, cout, H, W)


def fused_chain_nchw(convs, num_block, x, *, out_dtype):
    """Whole trunk (+ one extra conv) fused into a single pallas_call."""
    N, C, H, W = x.shape
    P = H * W
    cout_last = convs[-1][0].shape[0]
    operands = [x.reshape(N, C, P), _build_masks(H, W)]
    in_specs = [pl.BlockSpec((1, C, P), lambda n: (n, 0, 0)),
                pl.BlockSpec((9, 1, P), lambda n: (0, 0, 0))]
    for (w, b) in convs:
        ops, specs = _conv_operands(w, b)
        operands += ops
        in_specs += specs
    y = pl.pallas_call(
        partial(_chain_kernel, W=W, num_block=num_block),
        out_shape=jax.ShapeDtypeStruct((N, cout_last, P), out_dtype),
        grid=(N,),
        in_specs=in_specs,
        out_specs=pl.BlockSpec((1, cout_last, P), lambda n: (n, 0, 0)),
        compiler_params=pltpu.CompilerParams(
            dimension_semantics=("parallel",)),
    )(*operands)
    return y.reshape(N, cout_last, H, W)


# ----------------------------------------------------------------------------
# Glue (plain JAX, pure layout)
# ----------------------------------------------------------------------------
def pixel_shuffle_nchw(x, r):
    """torch.nn.PixelShuffle semantics on NCHW."""
    N, C, H, W = x.shape
    c = C // (r * r)
    x = x.reshape(N, c, r, r, H, W)
    x = jnp.transpose(x, (0, 1, 4, 2, 5, 3))
    return x.reshape(N, c, H * r, W * r)


def _up_factors(scale):
    if scale == 1:
        return []
    if scale == 3:
        return [3]
    return [2] * int(round(math.log2(scale)))


# ----------------------------------------------------------------------------
# Parameter init (PyTorch Conv2d default-style, torch OIHW weight layout)
# ----------------------------------------------------------------------------
def init_conv(key, cin, cout):
    k1, k2 = jax.random.split(key)
    bound = 1.0 / math.sqrt(cin * 9)
    w = jax.random.uniform(k1, (cout, cin, 3, 3), jnp.float32, -bound, bound)
    b = jax.random.uniform(k2, (cout,), jnp.float32, -bound, bound)
    return w, b


def init_single_network(key, num_block, num_feature, num_channel, scale):
    factors = _up_factors(scale)
    n_conv = 1 + 2 * num_block + 1 + len(factors) + 1
    keys = iter(jax.random.split(key, n_conv))
    params = {}
    params['head'] = init_conv(next(keys), num_channel, num_feature)
    params['blocks'] = [(init_conv(next(keys), num_feature, num_feature),
                         init_conv(next(keys), num_feature, num_feature))
                        for _ in range(num_block)]
    params['body_tail'] = init_conv(next(keys), num_feature, num_feature)
    params['up'] = [init_conv(next(keys), num_feature, r * r * num_feature)
                    for r in factors]
    params['tail'] = init_conv(next(keys), num_feature, num_channel)
    return params


def init_multi_network(key, config):
    nets = []
    for i, scale in enumerate((1, 2, 3, 4)):
        nets.append(init_single_network(
            jax.random.fold_in(key, i),
            num_block=config[scale]['block'],
            num_feature=config[scale]['feature'],
            num_channel=3,
            scale=scale))
    return nets


# ----------------------------------------------------------------------------
# Forward passes
# ----------------------------------------------------------------------------
@partial(jax.jit, static_argnums=(2,))
def single_network_forward(params, x, scale):
    convs = [params['head']]
    for (c1, c2) in params['blocks']:
        convs += [c1, c2]
    convs.append(params['body_tail'])
    num_block = len(params['blocks'])
    factors = _up_factors(scale)

    if scale == 1:
        convs.append(params['tail'])
        return fused_chain_nchw(convs, num_block, x, out_dtype=jnp.float32)

    # scale > 1: the first upsample conv rides inside the fused trunk kernel.
    convs.append(params['up'][0])
    y = fused_chain_nchw(convs, num_block, x, out_dtype=jnp.bfloat16)
    y = pixel_shuffle_nchw(y, factors[0])
    for (w, b), r in zip(params['up'][1:], factors[1:]):
        y = conv3x3_nchw(y, w, b, relu=False, out_dtype=jnp.bfloat16)
        y = pixel_shuffle_nchw(y, r)
    return conv3x3_nchw(y, *params['tail'], relu=False, out_dtype=jnp.float32)


def multi_network_forward(nets, x_nchw, target_scale):
    assert target_scale in (1, 2, 3, 4)
    return single_network_forward(nets[target_scale - 1], x_nchw, target_scale)


# ----------------------------------------------------------------------------
# Pure-JAX reference (for correctness checking only)
# ----------------------------------------------------------------------------
def _ref_conv(x, w, b):
    return jax.lax.conv_general_dilated(
        x, w, window_strides=(1, 1), padding='SAME',
        dimension_numbers=('NCHW', 'OIHW', 'NCHW')) + b[None, :, None, None]


def ref_single_forward(params, x, scale):
    x = _ref_conv(x, *params['head'])
    res = x
    for c1, c2 in params['blocks']:
        r = jnp.maximum(_ref_conv(res, *c1), 0.0)
        res = res + _ref_conv(r, *c2)
    res = _ref_conv(res, *params['body_tail']) + x
    for (w, b), r in zip(params['up'], _up_factors(scale)):
        res = pixel_shuffle_nchw(_ref_conv(res, w, b), r)
    return _ref_conv(res, *params['tail'])


# ----------------------------------------------------------------------------
# Main
# ----------------------------------------------------------------------------
if __name__ == "__main__":
    key = jax.random.PRNGKey(0)

    # small config: 2 ResBlocks, 16 features for every scale branch
    config = {s: {'block': 2, 'feature': 16} for s in (1, 2, 3, 4)}
    nets = init_multi_network(jax.random.fold_in(key, 100), config)

    # input: NCHW like the PyTorch module
    x = jax.random.normal(jax.random.fold_in(key, 200), (2, 3, 16, 16), jnp.float32)

    # 1) sanity-check a single Pallas conv against XLA's conv (bf16 matmul => loose tol)
    w0, b0 = nets[1]['head']
    ref = _ref_conv(x, w0, b0)
    got = conv3x3_nchw(x, w0, b0, relu=False, out_dtype=jnp.float32)
    assert jnp.allclose(ref, got, atol=5e-2, rtol=5e-2), "conv kernel mismatch"

    # 2) full x2 branch: (2, 3, 16, 16) -> (2, 3, 32, 32), vs pure-JAX reference
    y = multi_network_forward(nets, x, 2)
    y = jax.block_until_ready(y)
    assert y.shape == (2, 3, 32, 32)
    assert jnp.all(jnp.isfinite(y))
    y_ref = ref_single_forward(nets[1], x, 2)
    rel = float(jnp.max(jnp.abs(y - y_ref)) / (jnp.max(jnp.abs(y_ref)) + 1e-6))
    assert rel < 0.1, f"x2 forward mismatch (rel err {rel})"

    # 3) x4 branch exercises the two-stage upsample path + standalone conv kernel
    y4 = jax.block_until_ready(multi_network_forward(nets, x, 4))
    assert y4.shape == (2, 3, 64, 64)
    assert jnp.all(jnp.isfinite(y4))

    print("KERNEL_OK")
</pallas_src>

<mosaic_0001>
module attributes {stable_mosaic.version = 11 : i64} {
  func.func @_single_conv_kernel(%arg0: i32, %arg1: memref<1x3x256xf32, #tpu.memory_space<vmem>>, %arg2: memref<9x1x256xf32, #tpu.memory_space<vmem>>, %arg3: memref<9x16x3xbf16, #tpu.memory_space<vmem>>, %arg4: memref<16x1xf32, #tpu.memory_space<vmem>>, %arg5: memref<1x16x256xf32, #tpu.memory_space<vmem>>) attributes {dimension_semantics = [#tpu.dimension_semantics<parallel>], iteration_bounds = array<i64: 2>, scalar_prefetch = 0 : i64, scratch_operands = 0 : i64, tpu.core_type = #tpu.core_type<tc>, window_params = [{transform_indices = @transform_0, window_bounds = array<i64: 1, 3, 256>}, {pipeline_mode = #tpu.pipeline_mode<synchronous>, transform_indices = @transform_1, window_bounds = array<i64: 9, 1, 256>}, {pipeline_mode = #tpu.pipeline_mode<synchronous>, transform_indices = @transform_2, window_bounds = array<i64: 9, 16, 3>}, {pipeline_mode = #tpu.pipeline_mode<synchronous>, transform_indices = @transform_3, window_bounds = array<i64: 16, 1>}, {transform_indices = @transform_4, window_bounds = array<i64: 1, 16, 256>}]} {
    %c0 = arith.constant 0 : index
    %c0_0 = arith.constant 0 : index
    %c0_1 = arith.constant 0 : index
    %0 = vector.load %arg1[%c0, %c0_0, %c0_1] : memref<1x3x256xf32, #tpu.memory_space<vmem>>, vector<1x3x256xf32>
    %1 = vector.shape_cast %0 : vector<1x3x256xf32> to vector<3x256xf32>
    %cst = arith.constant 0.000000e+00 : f32
    %2 = vector.broadcast %cst : f32 to vector<16x256xf32>
    %c17_i32 = arith.constant 17 : i32
    %3 = tpu.dynamic_rotate %1 by %c17_i32 dim 1 : vector<3x256xf32>, i32 -> vector<3x256xf32>
    %c0_2 = arith.constant 0 : index
    %c0_3 = arith.constant 0 : index
    %c0_4 = arith.constant 0 : index
    %4 = vector.load %arg2[%c0_2, %c0_3, %c0_4] : memref<9x1x256xf32, #tpu.memory_space<vmem>>, vector<1x1x256xf32>
    %5 = vector.shape_cast %4 : vector<1x1x256xf32> to vector<1x256xf32>
    %6 = vector.broadcast %5 : vector<1x256xf32> to vector<3x256xf32>
    %7 = arith.mulf %3, %6 : vector<3x256xf32>
    %c0_5 = arith.constant 0 : index
    %c0_6 = arith.constant 0 : index
    %c0_7 = arith.constant 0 : index
    %8 = vector.load %arg3[%c0_5, %c0_6, %c0_7] : memref<9x16x3xbf16, #tpu.memory_space<vmem>>, vector<1x16x3xbf16>
    %9 = vector.shape_cast %8 : vector<1x16x3xbf16> to vector<16x3xbf16>
    %10 = arith.truncf %7 : vector<3x256xf32> to vector<3x256xbf16>
    %cst_8 = arith.constant dense<0.000000e+00> : vector<16x256xf32>
    %11 = tpu.matmul %9, %10, %cst_8 {dimension_numbers = #tpu.dot_dimension_numbers<[1], [0], [0], [1], [0, 0, 1, 1], [], []>} : vector<16x3xbf16>, vector<3x256xbf16>, vector<16x256xf32> -> vector<16x256xf32>
    %12 = arith.addf %2, %11 : vector<16x256xf32>
    %c16_i32 = arith.constant 16 : i32
    %13 = tpu.dynamic_rotate %1 by %c16_i32 dim 1 : vector<3x256xf32>, i32 -> vector<3x256xf32>
    %c1 = arith.constant 1 : index
    %c0_9 = arith.constant 0 : index
    %c0_10 = arith.constant 0 : index
    %14 = vector.load %arg2[%c1, %c0_9, %c0_10] : memref<9x1x256xf32, #tpu.memory_space<vmem>>, vector<1x1x256xf32>
    %15 = vector.shape_cast %14 : vector<1x1x256xf32> to vector<1x256xf32>
    %16 = vector.broadcast %15 : vector<1x256xf32> to vector<3x256xf32>
    %17 = arith.mulf %13, %16 : vector<3x256xf32>
    %c1_11 = arith.constant 1 : index
    %c0_12 = arith.constant 0 : index
    %c0_13 = arith.constant 0 : index
    %18 = vector.load %arg3[%c1_11, %c0_12, %c0_13] : memref<9x16x3xbf16, #tpu.memory_space<vmem>>, vector<1x16x3xbf16>
    %19 = vector.shape_cast %18 : vector<1x16x3xbf16> to vector<16x3xbf16>
    %20 = arith.truncf %17 : vector<3x256xf32> to vector<3x256xbf16>
    %cst_14 = arith.constant dense<0.000000e+00> : vector<16x256xf32>
    %21 = tpu.matmul %19, %20, %cst_14 {dimension_numbers = #tpu.dot_dimension_numbers<[1], [0], [0], [1], [0, 0, 1, 1], [], []>} : vector<16x3xbf16>, vector<3x256xbf16>, vector<16x256xf32> -> vector<16x256xf32>
    %22 = arith.addf %12, %21 : vector<16x256xf32>
    %c15_i32 = arith.constant 15 : i32
    %23 = tpu.dynamic_rotate %1 by %c15_i32 dim 1 : vector<3x256xf32>, i32 -> vector<3x256xf32>
    %c2 = arith.constant 2 : index
    %c0_15 = arith.constant 0 : index
    %c0_16 = arith.constant 0 : index
    %24 = vector.load %arg2[%c2, %c0_15, %c0_16] : memref<9x1x256xf32, #tpu.memory_space<vmem>>, vector<1x1x256xf32>
    %25 = vector.shape_cast %24 : vector<1x1x256xf32> to vector<1x256xf32>
    %26 = vector.broadcast %25 : vector<1x256xf32> to vector<3x256xf32>
    %27 = arith.mulf %23, %26 : vector<3x256xf32>
    %c2_17 = arith.constant 2 : index
    %c0_18 = arith.constant 0 : index
    %c0_19 = arith.constant 0 : index
    %28 = vector.load %arg3[%c2_17, %c0_18, %c0_19] : memref<9x16x3xbf16, #tpu.memory_space<vmem>>, vector<1x16x3xbf16>
    %29 = vector.shape_cast %28 : vector<1x16x3xbf16> to vector<16x3xbf16>
    %30 = arith.truncf %27 : vector<3x256xf32> to vector<3x256xbf16>
    %cst_20 = arith.constant dense<0.000000e+00> : vector<16x256xf32>
    %31 = tpu.matmul %29, %30, %cst_20 {dimension_numbers = #tpu.dot_dimension_numbers<[1], [0], [0], [1], [0, 0, 1, 1], [], []>} : vector<16x3xbf16>, vector<3x256xbf16>, vector<16x256xf32> -> vector<16x256xf32>
    %32 = arith.addf %22, %31 : vector<16x256xf32>
    %c1_i32 = arith.constant 1 : i32
    %33 = tpu.dynamic_rotate %1 by %c1_i32 dim 1 : vector<3x256xf32>, i32 -> vector<3x256xf32>
    %c3 = arith.constant 3 : index
    %c0_21 = arith.constant 0 : index
    %c0_22 = arith.constant 0 : index
    %34 = vector.load %arg2[%c3, %c0_21, %c0_22] : memref<9x1x256xf32, #tpu.memory_space<vmem>>, vector<1x1x256xf32>
    %35 = vector.shape_cast %34 : vector<1x1x256xf32> to vector<1x256xf32>
    %36 = vector.broadcast %35 : vector<1x256xf32> to vector<3x256xf32>
    %37 = arith.mulf %33, %36 : vector<3x256xf32>
    %c3_23 = arith.constant 3 : index
    %c0_24 = arith.constant 0 : index
    %c0_25 = arith.constant 0 : index
    %38 = vector.load %arg3[%c3_23, %c0_24, %c0_25] : memref<9x16x3xbf16, #tpu.memory_space<vmem>>, vector<1x16x3xbf16>
    %39 = vector.shape_cast %38 : vector<1x16x3xbf16> to vector<16x3xbf16>
    %40 = arith.truncf %37 : vector<3x256xf32> to vector<3x256xbf16>
    %cst_26 = arith.constant dense<0.000000e+00> : vector<16x256xf32>
    %41 = tpu.matmul %39, %40, %cst_26 {dimension_numbers = #tpu.dot_dimension_numbers<[1], [0], [0], [1], [0, 0, 1, 1], [], []>} : vector<16x3xbf16>, vector<3x256xbf16>, vector<16x256xf32> -> vector<16x256xf32>
    %42 = arith.addf %32, %41 : vector<16x256xf32>
    %c4 = arith.constant 4 : index
    %c0_27 = arith.constant 0 : index
    %c0_28 = arith.constant 0 : index
    %43 = vector.load %arg3[%c4, %c0_27, %c0_28] : memref<9x16x3xbf16, #tpu.memory_space<vmem>>, vector<1x16x3xbf16>
    %44 = vector.shape_cast %43 : vector<1x16x3xbf16> to vector<16x3xbf16>
    %45 = arith.truncf %1 : vector<3x256xf32> to vector<3x256xbf16>
    %cst_29 = arith.constant dense<0.000000e+00> : vector<16x256xf32>
    %46 = tpu.matmul %44, %45, %cst_29 {dimension_numbers = #tpu.dot_dimension_numbers<[1], [0], [0], [1], [0, 0, 1, 1], [], []>} : vector<16x3xbf16>, vector<3x256xbf16>, vector<16x256xf32> -> vector<16x256xf32>
    %47 = arith.addf %42, %46 : vector<16x256xf32>
    %c255_i32 = arith.constant 255 : i32
    %48 = tpu.dynamic_rotate %1 by %c255_i32 dim 1 : vector<3x256xf32>, i32 -> vector<3x256xf32>
    %c5 = arith.constant 5 : index
    %c0_30 = arith.constant 0 : index
    %c0_31 = arith.constant 0 : index
    %49 = vector.load %arg2[%c5, %c0_30, %c0_31] : memref<9x1x256xf32, #tpu.memory_space<vmem>>, vector<1x1x256xf32>
    %50 = vector.shape_cast %49 : vector<1x1x256xf32> to vector<1x256xf32>
    %51 = vector.broadcast %50 : vector<1x256xf32> to vector<3x256xf32>
    %52 = arith.mulf %48, %51 : vector<3x256xf32>
    %c5_32 = arith.constant 5 : index
    %c0_33 = arith.constant 0 : index
    %c0_34 = arith.constant 0 : index
    %53 = vector.load %arg3[%c5_32, %c0_33, %c0_34] : memref<9x16x3xbf16, #tpu.memory_space<vmem>>, vector<1x16x3xbf16>
    %54 = vector.shape_cast %53 : vector<1x16x3xbf16> to vector<16x3xbf16>
    %55 = arith.truncf %52 : vector<3x256xf32> to vector<3x256xbf16>
    %cst_35 = arith.constant dense<0.000000e+00> : vector<16x256xf32>
    %56 = tpu.matmul %54, %55, %cst_35 {dimension_numbers = #tpu.dot_dimension_numbers<[1], [0], [0], [1], [0, 0, 1, 1], [], []>} : vector<16x3xbf16>, vector<3x256xbf16>, vector<16x256xf32> -> vector<16x256xf32>
    %57 = arith.addf %47, %56 : vector<16x256xf32>
    %c241_i32 = arith.constant 241 : i32
    %58 = tpu.dynamic_rotate %1 by %c241_i32 dim 1 : vector<3x256xf32>, i32 -> vector<3x256xf32>
    %c6 = arith.constant 6 : index
    %c0_36 = arith.constant 0 : index
    %c0_37 = arith.constant 0 : index
    %59 = vector.load %arg2[%c6, %c0_36, %c0_37] : memref<9x1x256xf32, #tpu.memory_space<vmem>>, vector<1x1x256xf32>
    %60 = vector.shape_cast %59 : vector<1x1x256xf32> to vector<1x256xf32>
    %61 = vector.broadcast %60 : vector<1x256xf32> to vector<3x256xf32>
    %62 = arith.mulf %58, %61 : vector<3x256xf32>
    %c6_38 = arith.constant 6 : index
    %c0_39 = arith.constant 0 : index
    %c0_40 = arith.constant 0 : index
    %63 = vector.load %arg3[%c6_38, %c0_39, %c0_40] : memref<9x16x3xbf16, #tpu.memory_space<vmem>>, vector<1x16x3xbf16>
    %64 = vector.shape_cast %63 : vector<1x16x3xbf16> to vector<16x3xbf16>
    %65 = arith.truncf %62 : vector<3x256xf32> to vector<3x256xbf16>
    %cst_41 = arith.constant dense<0.000000e+00> : vector<16x256xf32>
    %66 = tpu.matmul %64, %65, %cst_41 {dimension_numbers = #tpu.dot_dimension_numbers<[1], [0], [0], [1], [0, 0, 1, 1], [], []>} : vector<16x3xbf16>, vector<3x256xbf16>, vector<16x256xf32> -> vector<16x256xf32>
    %67 = arith.addf %57, %66 : vector<16x256xf32>
    %c240_i32 = arith.constant 240 : i32
    %68 = tpu.dynamic_rotate %1 by %c240_i32 dim 1 : vector<3x256xf32>, i32 -> vector<3x256xf32>
    %c7 = arith.constant 7 : index
    %c0_42 = arith.constant 0 : index
    %c0_43 = arith.constant 0 : index
    %69 = vector.load %arg2[%c7, %c0_42, %c0_43] : memref<9x1x256xf32, #tpu.memory_space<vmem>>, vector<1x1x256xf32>
    %70 = vector.shape_cast %69 : vector<1x1x256xf32> to vector<1x256xf32>
    %71 = vector.broadcast %70 : vector<1x256xf32> to vector<3x256xf32>
    %72 = arith.mulf %68, %71 : vector<3x256xf32>
    %c7_44 = arith.constant 7 : index
    %c0_45 = arith.constant 0 : index
    %c0_46 = arith.constant 0 : index
    %73 = vector.load %arg3[%c7_44, %c0_45, %c0_46] : memref<9x16x3xbf16, #tpu.memory_space<vmem>>, vector<1x16x3xbf16>
    %74 = vector.shape_cast %73 : vector<1x16x3xbf16> to vector<16x3xbf16>
    %75 = arith.truncf %72 : vector<3x256xf32> to vector<3x256xbf16>
    %cst_47 = arith.constant dense<0.000000e+00> : vector<16x256xf32>
    %76 = tpu.matmul %74, %75, %cst_47 {dimension_numbers = #tpu.dot_dimension_numbers<[1], [0], [0], [1], [0, 0, 1, 1], [], []>} : vector<16x3xbf16>, vector<3x256xbf16>, vector<16x256xf32> -> vector<16x256xf32>
    %77 = arith.addf %67, %76 : vector<16x256xf32>
    %c239_i32 = arith.constant 239 : i32
    %78 = tpu.dynamic_rotate %1 by %c239_i32 dim 1 : vector<3x256xf32>, i32 -> vector<3x256xf32>
    %c8 = arith.constant 8 : index
    %c0_48 = arith.constant 0 : index
    %c0_49 = arith.constant 0 : index
    %79 = vector.load %arg2[%c8, %c0_48, %c0_49] : memref<9x1x256xf32, #tpu.memory_space<vmem>>, vector<1x1x256xf32>
    %80 = vector.shape_cast %79 : vector<1x1x256xf32> to vector<1x256xf32>
    %81 = vector.broadcast %80 : vector<1x256xf32> to vector<3x256xf32>
    %82 = arith.mulf %78, %81 : vector<3x256xf32>
    %c8_50 = arith.constant 8 : index
    %c0_51 = arith.constant 0 : index
    %c0_52 = arith.constant 0 : index
    %83 = vector.load %arg3[%c8_50, %c0_51, %c0_52] : memref<9x16x3xbf16, #tpu.memory_space<vmem>>, vector<1x16x3xbf16>
    %84 = vector.shape_cast %83 : vector<1x16x3xbf16> to vector<16x3xbf16>
    %85 = arith.truncf %82 : vector<3x256xf32> to vector<3x256xbf16>
    %cst_53 = arith.constant dense<0.000000e+00> : vector<16x256xf32>
    %86 = tpu.matmul %84, %85, %cst_53 {dimension_numbers = #tpu.dot_dimension_numbers<[1], [0], [0], [1], [0, 0, 1, 1], [], []>} : vector<16x3xbf16>, vector<3x256xbf16>, vector<16x256xf32> -> vector<16x256xf32>
    %87 = arith.addf %77, %86 : vector<16x256xf32>
    %c0_54 = arith.constant 0 : index
    %c0_55 = arith.constant 0 : index
    %88 = vector.load %arg4[%c0_54, %c0_55] : memref<16x1xf32, #tpu.memory_space<vmem>>, vector<16x1xf32>
    %89 = vector.broadcast %88 : vector<16x1xf32> to vector<16x256xf32>
    %90 = arith.addf %87, %89 : vector<16x256xf32>
    %c0_56 = arith.constant 0 : index
    %c0_57 = arith.constant 0 : index
    %c0_58 = arith.constant 0 : index
    %91 = vector.load %arg5[%c0_56, %c0_57, %c0_58] : memref<1x16x256xf32, #tpu.memory_space<vmem>>, vector<1x16x256xf32>
    %92 = vector.shape_cast %91 : vector<1x16x256xf32> to vector<16x256xf32>
    %93 = vector.shape_cast %90 : vector<16x256xf32> to vector<1x16x256xf32>
    tpu.vector_store %arg5[%c0_56, %c0_57, %c0_58], %93 {strides = array<i32>} : memref<1x16x256xf32, #tpu.memory_space<vmem>>, vector<1x16x256xf32>,
    return
  }
  func.func @transform_0(%arg0: i32) -> (i32, i32, i32) {
    %c0_i32 = arith.constant 0 : i32
    %c0_i32_0 = arith.constant 0 : i32
    %c0_i32_1 = arith.constant 0 : i32
    return %arg0, %c0_i32, %c0_i32_0 : i32, i32, i32
  }
  func.func @transform_1(%arg0: i32) -> (i32, i32, i32) {
    %c0_i32 = arith.constant 0 : i32
    %c0_i32_0 = arith.constant 0 : i32
    %c0_i32_1 = arith.constant 0 : i32
    %c0_i32_2 = arith.constant 0 : i32
    return %c0_i32, %c0_i32_0, %c0_i32_1 : i32, i32, i32
  }
  func.func @transform_2(%arg0: i32) -> (i32, i32, i32) {
    %c0_i32 = arith.constant 0 : i32
    %c0_i32_0 = arith.constant 0 : i32
    %c0_i32_1 = arith.constant 0 : i32
    %c0_i32_2 = arith.constant 0 : i32
    return %c0_i32, %c0_i32_0, %c0_i32_1 : i32, i32, i32
  }
  func.func @transform_3(%arg0: i32) -> (i32, i32) {
    %c0_i32 = arith.constant 0 : i32
    %c0_i32_0 = arith.constant 0 : i32
    %c0_i32_1 = arith.constant 0 : i32
    return %c0_i32, %c0_i32_0 : i32, i32
  }
  func.func @transform_4(%arg0: i32) -> (i32, i32, i32) {
    %c0_i32 = arith.constant 0 : i32
    %c0_i32_0 = arith.constant 0 : i32
    %c0_i32_1 = arith.constant 0 : i32
    return %arg0, %c0_i32, %c0_i32_0 : i32, i32, i32
  }
}

</mosaic_0001>

<bundles_post_ra>
// kernel: tpu_custom_call.1
= control target key start
LH: loop header
LB: loop body
LE: loop exit
PB: predicated region body
PF: predicated region fallthrough
CT: control target
= control target key end

     0   :  { %9 = vsyncpa [#allocation3], 0  ;;  %s1571_s0 = inlined_call_operand.vmem [shape: f32[2,3,256], index: 0, kind: input, shape index: {}]   ;;  %s1572_s1 = inlined_call_operand.vmem [shape: f32[9,1,256], index: 1, kind: input, shape index: {}]   ;;  %s1573_s2 = inlined_call_operand.vmem [shape: bf16[9,16,3], index: 2, kind: input, shape index: {}]   ;;  %s1574_s3 = inlined_call_operand.vmem [shape: f32[16,1], index: 3, kind: input, shape index: {}]   ;;  %s1575_s4 = inlined_call_operand.hbm [shape: f32[2,16,256], index: 4, kind: output, shape index: {}]  }
   0x1   :  { %11 = vsyncpa [#allocation3 + $0x1], 0  ;;  %s1280_s15 = smov 0   ;;  %s1282_s16 = smov 0  }
   0x2   :  { %s1284_s17 = smov 0   ;;  %s1286_s18 = smov 0  }
   0x3 LB: > { %s1301_s19 = sadd.s32 4294967295, %s1241_s18   ;;  %s1064_s20 = sadd.s32 4294967294, %s1241_s18   ;;  %s1241_s18 = sphi %s1286_s18, %s1581_s18   ;;  %s1237_s17 = sphi %s1284_s17, %s1580_s17   ;;  %s1233_s16 = sphi %s1282_s16, %s1579_s16   ;;  %s1229_s15 = sphi %s1280_s15, %s1578_s15  }
   0x4   : > { %s1305_s21 = sadd.s32 1, %s1241_s18   ;;  %s113_s22 = sadd.s32 1, %s1237_s17 }
   0x5   : > { %s110_s23 = ssub.s32 %s1241_s18, %s1305_s21  ;;  %p123_p0 = scmp.ne.s32.totalorder %s1237_s17, %s1233_s16 }
   0x6   : > { %p111_p1 = scmp.eq.s32.totalorder %s110_s23, 0  ;;  %p124_p2 = scmp.eq.s32.totalorder %s1301_s19, 1 }
   0x7   : > { %p129_p3 = scmp.ne.s32.totalorder %s1233_s16, %s1229_s15  ;;  %p130_p4 = scmp.eq.s32.totalorder %s1064_s20, 1 }
   0x8   : > { %s1316_s24 = scalar_select %p111_p1, %s1237_s17, %s113_s22  }
   0x9   : > { %p1318_p5 = por %p124_p2, %p123_p0  ;;  %p1322_p6 = por %p130_p4, %p129_p3 }
   0xa   : > { %p1067_p7 = scmp.ge.s32.totalorder %s1241_s18, 1  ;;  %p165_p8 = scmp.lt.s32.totalorder %s1241_s18, 3 }
   0xc   : > { %p166_p9 = pnand %p1067_p7, %p165_p8 }
   0xd   : > { %p191_p10 = scmp.lt.s32.totalorder (!%p166_p9), %s1301_s19, 1  ;;  %s1243_s6 = smov (!%p166_p9), 17  }
   0xe   : > { %169 = sbr.rel (%p166_p9) target bundleno = 403 (0x193), region = 36  ;;  %s1244_s7 = smov (!%p166_p9), 16  }
   0xf   : > { %s1246_s8 = smov (!%p166_p9), 15   ;;  %s1247_s9 = smov (!%p166_p9), 1  }
  0x10   : > { %s1248_s10 = smov (!%p166_p9), 127   ;;  %s1249_s11 = smov (!%p166_p9), 113  }
  0x11   : > { %s1250_s12 = smov (!%p166_p9), 112   ;;  %s1251_s13 = smov (!%p166_p9), 111  }
  0x12   : > { %s188_s29 = sand.u32 (!%p166_p9), 1, %s1233_s16  }
  0x13   : > { %s192_s27 = scalar_select %p191_p10, %s1301_s19, 1  ;;  %v1245_v2 = vmov 0   ;;  %v968_v3 = vld [vmem:[%s1574_s3] sm:$0xff]  ;;  %v969_v4 = vld [vmem:[%s1574_s3 + $0x8] sm:$0xff]  ;;  %v205_v5 = vlaneseq  ;;  %vm264_vm2 = vcmask 1040384   ;;  %vm265_vm3 = vcmask 1041408  }
  0x14   : > { %306 = vmatprep.mubr.bf16.mxu0 %v1245_v2  ;;  %363 = vmatprep.mubr.bf16.mxu1 %v1245_v2  ;;  %v210_v10 = vld [vmem:[%s1572_s1] sm:$0x3]  ;;  %v1071_v11 = vld [vmem:[%s1572_s1 + $0x2] sm:$0x3]  ;;  %v1078_v14 = vld [vmem:[%s1572_s1 + $0x4] sm:$0x3] }
  0x15   : > { %s1117_s28 = sshll.u32 %s192_s27, 3  ;;  %1169 = vset.pattern.permute.xlu0 %v1245_v2  ;;  %1170 = vset.pattern.permute.xlu1 %v1245_v2  ;;  %v213_v6 = vshrl.u32 %v205_v5, 7  ;;  %v1367_v7 = vand.u32 127, %v205_v5  ;;  %v1252_v21 = vmov 65535   ;;  %v1083_v33 = vld [vmem:[%s1572_s1 + $0x6] sm:$0x3] }
  0x16   : > { %s195_s5 = scalar_lea.vmem %s1571_s0, %s1117_s28  ;;  %v266_v22 = vsel %vm264_vm2, 4294967295, %v1252_v21  ;;  %v1092_v45 = vld [vmem:[%s1572_s1 + $0xa] sm:$0x3]  ;;  %vm260_vm6 = vcmask 23552   ;;  %v1173_v58 = vld [vmem:[%s1573_s2] sm:$0xff]   ;;  %s1068_s30 = sshll.u32 %s188_s29, 5 }
  0x17   : > { %v1333_v0 = vld [vmem:[%s195_s5] sm:$0x77]  ;;  %v1369_v8 = vsub.s32 0, %v213_v6  ;;  %v1371_v9 = vsub.s32 1, %v213_v6  ;;  %vm207_vm0 = vcmp.lt.s32.totalorder %v1367_v7, 17  ;;  %vm232_vm1 = vcmp.lt.s32.totalorder %v1367_v7, 16 }
  0x18   : > { %201 = vrot.lane.b32.xlu1 %v1333_v0, %s1243_s6  ;;  %228 = vrot.lane.b32.xlu0 %v1333_v0, %s1244_s7  ;;  %v1340_v1 = vcombine.high %v1333_v0, %v1333_v0  ;;  %vm378_vm4 = vcmp.lt.s32.totalorder %v1367_v7, 15  ;;  %v1403_v34 = vsel %vm265_vm3, %v266_v22, 0  ;;  %vm466_vm5 = vcmp.lt.s32.totalorder %v1367_v7, 1  ;;  %v1172_v57 = vld [vmem:[%s1573_s2 + $0x8] sm:$0xff]   ;;  %s190_s5 = scalar_lea.vmem [#allocation2], %s1068_s30 }
  0x19   : > { %v215_v15 = vrot.slane %v210_v10, %v1369_v8  ;;  %v241_v16 = vrot.slane %v1071_v11, %v1369_v8  ;;  %v245_v17 = vrot.slane %v1071_v11, %v1371_v9  ;;  %v219_v18 = vrot.slane %v210_v10, %v1371_v9  ;;  %v1097_v60 = vld [vmem:[%s1572_s1 + $0xc] sm:$0x3] }
  0x1a   : > { %v387_v23 = vrot.slane %v1078_v14, %v1369_v8  ;;  %v391_v24 = vrot.slane %v1078_v14, %v1371_v9  ;;  %v475_v43 = vrot.slane %v1083_v33, %v1369_v8  ;;  %v479_v44 = vrot.slane %v1083_v33, %v1371_v9 }
  0x1b   : > { %v554_v52 = vpack.c.bf16 %v1340_v1, %v1340_v1  ;;  %v629_v59 = vrot.slane %v1092_v45, %v1369_v8  ;;  %vm620_vm7 = vcmp.lt.s32.totalorder %v1367_v7, 127  ;;  %v633_v63 = vrot.slane %v1092_v45, %v1371_v9 }
  0x1c   : > { %203 = vrot.lane.b32.xlu1 %v1340_v1, %s1243_s6  ;;  %230 = vrot.lane.b32.xlu0 %v1340_v1, %s1244_s7  ;;  %v717_v6 = vrot.slane %v1097_v60, %v1369_v8  ;;  %vm708_vm8 = vcmp.lt.s32.totalorder %v1367_v7, 113  ;;  %vm796_vm9 = vcmp.lt.s32.totalorder %v1367_v7, 112  ;;  %vm884_vm10 = vcmp.lt.s32.totalorder %v1367_v7, 111  ;;  %s1002_s6 = sshll.u32 %s190_s5, 4  ;;  %s1521_s6 = int_to_ptr.vmem [resolvable:$true] %s1002_s6 }
  0x1d   : > { %v567_v10 = vand.u32 %v554_v52, %v1403_v34 }
  0x20   : > { %376 = vrot.lane.b32.xlu1 %v1340_v1, %s1246_s8  ;;  %374 = vrot.lane.b32.xlu0 %v1333_v0, %s1246_s8  ;;  %s1118_s8 = sshll.u32 %s1301_s19, 9  ;;  %s1181_s19 = scalar_lea.vmem %s1521_s6, 512 }
  0x21   : > { %p1182_p11 = scmp.ne.s32.totalorder %s1521_s6, %s1181_s19 }
  0x23   : > { %p1183_p12 = pnand %p1182_p11, %p1318_p5 }
  0x24   : > { %464 = vrot.lane.b32.xlu1 %v1340_v1, %s1247_s9  ;;  %462 = vrot.lane.b32.xlu0 %v1333_v0, %s1247_s9 }
  0x25   : > { %p1184_p13 = pneg %p1183_p12 }
  0x28   : > { %618 = vrot.lane.b32.xlu1 %v1340_v1, %s1248_s10  ;;  %616 = vrot.lane.b32.xlu0 %v1333_v0, %s1248_s10 }
  0x2c   : > { %706 = vrot.lane.b32.xlu1 %v1340_v1, %s1249_s11  ;;  %704 = vrot.lane.b32.xlu0 %v1333_v0, %s1249_s11  ;;  %s1526_s11 = scalar_lea.hbm %s1575_s4, %s1118_s8 }
  0x30   : > { %794 = vrot.lane.b32.xlu1 %v1340_v1, %s1250_s12  ;;  %792 = vrot.lane.b32.xlu0 %v1333_v0, %s1250_s12  ;;  %s1530_s12 = scalar_lea.sflag [#allocation3], %s188_s29 }
  0x34   : > { %882 = vrot.lane.b32.xlu1 %v1340_v1, %s1251_s13  ;;  %880 = vrot.lane.b32.xlu0 %v1333_v0, %s1251_s13  ;;  %s1253_s13 = smov [#allocation2]  }
  0x35   : > { %s1185_s14 = sshll.u32 %s1253_s13, 4  ;;  %s1186_s14 = int_to_ptr.vmem [resolvable:$false] %s1185_s14 }
  0x36   : > { %s1187_s20 = scalar_lea.vmem %s1186_s14, 1024  ;;  %p1188_p0 = scmp.lt.s32.totalorder %s1521_s6, %s1186_s14 }
  0x37   : > { %p1189_p1 = scmp.lt.s32.totalorder %s1187_s20, %s1181_s19 }
  0x38   : > { %972 = vperm.xlu0 %1169, %v968_v3   ;;  %977 = vperm.xlu1 %1170, %v969_v4  }
  0x39   : > { %p1190_p2 = por %p1189_p1, %p1188_p0 }
  0x3b   : > { %p1191_p3 = pnand %p1190_p2, %p1184_p13 }
  0x8a   : > { %v202_v12 = vpop.permute.xlu1 %201  ;;  %v229_v13 = vpop.permute.xlu0 %228 }
  0x8e   : > { %v204_v19 = vpop.permute.xlu1 %203  ;;  %v231_v20 = vpop.permute.xlu0 %230 }
  0x8f   : > { %v208_v25 = vsel %vm207_vm0, %v202_v12, %v204_v19  ;;  %v209_v26 = vsel %vm207_vm0, %v204_v19, %v202_v12  ;;  %v233_v27 = vsel %vm232_vm1, %v229_v13, %v231_v20  ;;  %v234_v28 = vsel %vm232_vm1, %v231_v20, %v229_v13  ;;  %v1102_v19 = vld [vmem:[%s1572_s1 + $0xe] sm:$0x3] }
  0x90   : > { %v222_v29 = vmul.f32 %v215_v15, %v209_v26  ;;  %v248_v30 = vmul.f32 %v241_v16, %v234_v28  ;;  %v249_v31 = vmul.f32 %v245_v17, %v233_v27  ;;  %v223_v32 = vmul.f32 %v219_v18, %v208_v25  ;;  %v1175_v28 = vld [vmem:[%s1573_s2 + $0x18] sm:$0xff]  }
  0x91   : > { %v721_v15 = vrot.slane %v1097_v60, %v1371_v9  ;;  %v553_v18 = vpack.c.bf16 %v1333_v0, %v1333_v0  ;;  %v1174_v0 = vld [vmem:[%s1573_s2 + $0x10] sm:$0xff]   ;;  %v809_v33 = vrot.slane %v1102_v19, %v1371_v9 }
  0x92   : > { %v226_v35 = vpack.c.bf16 %v222_v29, %v222_v29  ;;  %v253_v36 = vpack.c.bf16 %v248_v30, %v248_v30  ;;  %v377_v37 = vpop.permute.xlu1 %376  ;;  %v375_v38 = vpop.permute.xlu0 %374  ;;  %v254_v39 = vpack.c.bf16 %v249_v31, %v249_v31  ;;  %v227_v40 = vpack.c.bf16 %v223_v32, %v223_v32 }
  0x93   : > { %v379_v41 = vsel %vm378_vm4, %v375_v38, %v377_v37  ;;  %v380_v42 = vsel %vm378_vm4, %v377_v37, %v375_v38  ;;  %v805_v29 = vrot.slane %v1102_v19, %v1369_v8  ;;  %v564_v32 = vand.u32 %v553_v18, %v1403_v34 }
  0x94   : > { %v394_v46 = vmul.f32 %v387_v23, %v380_v42  ;;  %v395_v47 = vmul.f32 %v391_v24, %v379_v41  ;;  %v272_v48 = vand.u32 %v1403_v34, %v254_v39  ;;  %v329_v49 = vand.u32 %v1403_v34, %v227_v40 }
  0x95   : > { %v326_v50 = vand.u32 %v1403_v34, %v226_v35  ;;  %v269_v51 = vand.u32 %v1403_v34, %v253_v36  ;;  %v1107_v35 = vld [vmem:[%s1572_s1 + $0x10] sm:$0x3] }
  0x96   : > { %v399_v53 = vpack.c.bf16 %v394_v46, %v394_v46  ;;  %v400_v54 = vpack.c.bf16 %v395_v47, %v395_v47  ;;  %288 = vmatprep.subr.bf16.mxu0 %v272_v48  ;;  %345 = vmatprep.subr.bf16.mxu1 %v329_v49  ;;  %v465_v55 = vpop.permute.xlu1 %464  ;;  %v463_v56 = vpop.permute.xlu0 %462  ;;  %v897_v49 = vrot.slane %v1107_v35, %v1371_v9 }
  0x97   : > { %346 = vmatpush1.bf16.msra.mxu1 %v326_v50  ;;  %289 = vmatpush1.bf16.msra.mxu0 %v269_v51  ;;  %v467_v61 = vsel %vm466_vm5, %v463_v56, %v465_v55  ;;  %v468_v62 = vsel %vm466_vm5, %v465_v55, %v463_v56  ;;  %v1177_v55 = vld [vmem:[%s1573_s2 + $0x28] sm:$0xff]  }
  0x98   : > { %v410_v1 = vand.u32 %v399_v53, %v1403_v34  ;;  %v482_v3 = vmul.f32 %v475_v43, %v468_v62  ;;  %v483_v4 = vmul.f32 %v479_v44, %v467_v61  ;;  %v413_v5 = vand.u32 %v400_v54, %v1403_v34  ;;  %v1176_v54 = vld [vmem:[%s1573_s2 + $0x20] sm:$0xff]  }
  0x99   : > { %v893_v43 = vrot.slane %v1107_v35, %v1369_v8 }
  0x9a   : > { %v487_v11 = vpack.c.bf16 %v482_v3, %v482_v3  ;;  %v488_v12 = vpack.c.bf16 %v483_v4, %v483_v4  ;;  %1075 = vmatmul.mubr.msk.bf16.vlgmr.msra.gmra.mxu0 %vm260_vm6, %v1172_v57  ;;  %1077 = vmatmul.mubr.msk.bf16.vlgmr.msra.gmra.mxu1 %vm260_vm6, %v1173_v58  ;;  %v619_v13 = vpop.permute.xlu1 %618  ;;  %v617_v14 = vpop.permute.xlu0 %616  ;;  %v1179_v3 = vld [vmem:[%s1573_s2 + $0x38] sm:$0xff]  }
  0x9b   : > { %429 = vmatprep.subr.bf16.mxu0 %v413_v5  ;;  %v621_v16 = vsel %vm620_vm7, %v617_v14, %v619_v13  ;;  %v622_v17 = vsel %vm620_vm7, %v619_v13, %v617_v14  ;;  %447 = vmatprep.mubr.bf16.mxu0 %v1245_v2  ;;  %v1180_v5 = vld [vmem:[%s1573_s2 + $0x40] sm:$0xff]  }
  0x9c   : > { %v498_v20 = vand.u32 %v487_v11, %v1403_v34  ;;  %430 = vmatpush1.bf16.msra.mxu0 %v410_v1  ;;  %v636_v21 = vmul.f32 %v629_v59, %v621_v16  ;;  %v637_v22 = vmul.f32 %v633_v63, %v622_v17  ;;  %v501_v23 = vand.u32 %v488_v12, %v1403_v34  ;;  %v1178_v1 = vld [vmem:[%s1573_s2 + $0x30] sm:$0xff]  }
  0x9d   : > { %535 = vmatprep.mubr.bf16.mxu1 %v1245_v2  ;;  %583 = vmatprep.subr.bf16.mxu0 %v567_v10 }
  0x9e   : > { %v641_v24 = vpack.c.bf16 %v636_v21, %v636_v21  ;;  %v642_v25 = vpack.c.bf16 %v637_v22, %v637_v22  ;;  %517 = vmatprep.subr.bf16.mxu1 %v501_v23  ;;  %v707_v26 = vpop.permute.xlu1 %706  ;;  %v705_v27 = vpop.permute.xlu0 %704 }
  0x9f   : > { %518 = vmatpush1.bf16.msra.mxu1 %v498_v20  ;;  %v709_v30 = vsel %vm708_vm8, %v705_v27, %v707_v26  ;;  %v710_v31 = vsel %vm708_vm8, %v707_v26, %v705_v27 }
  0xa0   : > { %v652_v36 = vand.u32 %v641_v24, %v1403_v34  ;;  %v724_v37 = vmul.f32 %v717_v6, %v709_v30  ;;  %v725_v38 = vmul.f32 %v721_v15, %v710_v31  ;;  %v655_v39 = vand.u32 %v642_v25, %v1403_v34 }
  0xa2   : > { %v730_v40 = vpack.c.bf16 %v725_v38, %v725_v38  ;;  %1082 = vmatmul.mubr.msk.bf16.vlgmr.msra.gmra.mxu0 %vm260_vm6, %v1174_v0  ;;  %1087 = vmatmul.mubr.msk.bf16.vlgmr.msra.gmra.mxu1 %vm260_vm6, %v1175_v28  ;;  %v795_v41 = vpop.permute.xlu1 %794  ;;  %v793_v42 = vpop.permute.xlu0 %792  ;;  %v729_v44 = vpack.c.bf16 %v724_v37, %v724_v37 }
  0xa3   : > { %584 = vmatpush1.bf16.msra.mxu0 %v564_v32  ;;  %671 = vmatprep.subr.bf16.mxu1 %v655_v39  ;;  %v797_v45 = vsel %vm796_vm9, %v793_v42, %v795_v41  ;;  %v798_v46 = vsel %vm796_vm9, %v795_v41, %v793_v42 }
  0xa4   : > { %v812_v47 = vmul.f32 %v805_v29, %v797_v45  ;;  %v813_v48 = vmul.f32 %v809_v33, %v798_v46  ;;  %672 = vmatpush1.bf16.msra.mxu1 %v652_v36  ;;  %601 = vmatprep.mubr.bf16.mxu0 %v1245_v2  ;;  %v743_v8 = vand.u32 %v730_v40, %v1403_v34 }
  0xa5   : > { %689 = vmatprep.mubr.bf16.mxu1 %v1245_v2  ;;  %v740_v7 = vand.u32 %v729_v44, %v1403_v34 }
  0xa6   : > { %v817_v50 = vpack.c.bf16 %v812_v47, %v812_v47  ;;  %v818_v51 = vpack.c.bf16 %v813_v48, %v813_v48  ;;  %v883_v52 = vpop.permute.xlu1 %882  ;;  %v881_v53 = vpop.permute.xlu0 %880  ;;  %759 = vmatprep.subr.bf16.mxu0 %v743_v8 }
  0xa7   : > { %v885_v56 = vsel %vm884_vm10, %v881_v53, %v883_v52  ;;  %v886_v9 = vsel %vm884_vm10, %v883_v52, %v881_v53 }
  0xa8   : > { %v828_v57 = vand.u32 %v817_v50, %v1403_v34  ;;  %v900_v58 = vmul.f32 %v893_v43, %v885_v56  ;;  %v901_v59 = vmul.f32 %v897_v49, %v886_v9  ;;  %v831_v60 = vand.u32 %v818_v51, %v1403_v34 }
  0xaa   : > { %v906_v61 = vpack.c.bf16 %v901_v59, %v901_v59  ;;  %1091 = vmatmul.mubr.msk.bf16.vlgmr.msra.gmra.mxu0 %vm260_vm6, %v1176_v54  ;;  %1096 = vmatmul.mubr.msk.bf16.vlgmr.msra.gmra.mxu1 %vm260_vm6, %v1177_v55  ;;  %v905_v62 = vpack.c.bf16 %v900_v58, %v900_v58 }
  0xab   : > { %760 = vmatpush1.bf16.msra.mxu0 %v740_v7  ;;  %847 = vmatprep.subr.bf16.mxu1 %v831_v60 }
  0xac   : > { %848 = vmatpush1.bf16.msra.mxu1 %v828_v57  ;;  %777 = vmatprep.mubr.bf16.mxu0 %v1245_v2  ;;  %v919_v63 = vand.u32 %v906_v61, %v1403_v34  ;;  %v916_v4 = vand.u32 %v905_v62, %v1403_v34 }
  0xad   : > { %865 = vmatprep.mubr.bf16.mxu1 %v1245_v2 }
  0xae   : > { %935 = vmatprep.subr.bf16.mxu0 %v919_v63 }
  0xb2   : > { %1101 = vmatmul.mubr.msk.bf16.vlgmr.msra.gmra.mxu0 %vm260_vm6, %v1178_v1  ;;  %1106 = vmatmul.mubr.msk.bf16.vlgmr.msra.gmra.mxu1 %vm260_vm6, %v1179_v3 }
  0xb3   : > { %936 = vmatpush1.bf16.msra.mxu0 %v916_v4  ;;  %953 = vmatprep.mubr.bf16.mxu0 %v1245_v2  ;;  %v973_v58 = vpop.permute.xlu0 %972 }
  0xba   : > { %1111 = vmatmul.mubr.msk.bf16.vlgmr.msra.gmra.mxu0 %vm260_vm6, %v1180_v5 }
 0x15a   : > { %v308_v6 = vpop.f32.mrf.mxu0  ;;  %v365_v10 = vpop.f32.mrf.mxu1 }
 0x15b   : > { %v366_v21 = vadd.f32 %v365_v10, %v308_v6  ;;  %v978_v6 = vpop.permute.xlu1 %977 }
 0x15c   : > { %v310_v11 = vpop.f32.mrf.mxu0  ;;  %v367_v12 = vpop.f32.mrf.mxu1 }
 0x15d   : > { %v368_v24 = vadd.f32 %v367_v12, %v310_v11 }
 0x15e   : > { %v312_v13 = vpop.f32.mrf.mxu0  ;;  %v369_v14 = vpop.f32.mrf.mxu1 }
 0x15f   : > { %v370_v0 = vadd.f32 %v369_v14, %v312_v13 }
 0x160   : > { %v314_v34 = vpop.f32.mrf.mxu0  ;;  %v371_v15 = vpop.f32.mrf.mxu1 }
 0x161   : > { %v372_v31 = vadd.f32 %v371_v15, %v314_v34 }
 0x162   : > { %v449_v16 = vpop.f32.mrf.mxu0  ;;  %v537_v17 = vpop.f32.mrf.mxu1 }
 0x163   : > { %v458_v25 = vadd.f32 %v449_v16, %v366_v21 }
 0x164   : > { %v451_v18 = vpop.f32.mrf.mxu0  ;;  %v539_v19 = vpop.f32.mrf.mxu1 }
 0x165   : > { %v459_v28 = vadd.f32 %v451_v18, %v368_v24  ;;  %v546_v32 = vadd.f32 %v537_v17, %v458_v25 }
 0x166   : > { %v453_v20 = vpop.f32.mrf.mxu0  ;;  %v541_v2 = vpop.f32.mrf.mxu1 }
 0x167   : > { %v460_v33 = vadd.f32 %v453_v20, %v370_v0  ;;  %v547_v37 = vadd.f32 %v539_v19, %v459_v28 }
 0x168   : > { %v455_v22 = vpop.f32.mrf.mxu0  ;;  %v543_v23 = vpop.f32.mrf.mxu1 }
 0x169   : > { %v461_v38 = vadd.f32 %v455_v22, %v372_v31  ;;  %v548_v42 = vadd.f32 %v541_v2, %v460_v33 }
 0x16a   : > { %v603_v26 = vpop.f32.mrf.mxu0  ;;  %v691_v27 = vpop.f32.mrf.mxu1 }
 0x16b   : > { %v612_v39 = vadd.f32 %v603_v26, %v546_v32  ;;  %v549_v46 = vadd.f32 %v543_v23, %v461_v38 }
 0x16c   : > { %v605_v29 = vpop.f32.mrf.mxu0  ;;  %v693_v30 = vpop.f32.mrf.mxu1 }
 0x16d   : > { %v613_v43 = vadd.f32 %v605_v29, %v547_v37  ;;  %v700_v47 = vadd.f32 %v691_v27, %v612_v39 }
 0x16e   : > { %v607_v35 = vpop.f32.mrf.mxu0  ;;  %v695_v36 = vpop.f32.mrf.mxu1 }
 0x16f   : > { %v614_v48 = vadd.f32 %v607_v35, %v548_v42  ;;  %v701_v8 = vadd.f32 %v693_v30, %v613_v43 }
 0x170   : > { %v609_v40 = vpop.f32.mrf.mxu0  ;;  %v697_v41 = vpop.f32.mrf.mxu1 }
 0x171   : > { %v615_v50 = vadd.f32 %v609_v40, %v549_v46  ;;  %v702_v54 = vadd.f32 %v695_v36, %v614_v48 }
 0x172   : > { %v779_v44 = vpop.f32.mrf.mxu0  ;;  %v867_v45 = vpop.f32.mrf.mxu1 }
 0x173   : > { %v788_v51 = vadd.f32 %v779_v44, %v700_v47  ;;  %v703_v56 = vadd.f32 %v697_v41, %v615_v50 }
 0x174   : > { %v781_v49 = vpop.f32.mrf.mxu0  ;;  %v869_v52 = vpop.f32.mrf.mxu1 }
 0x175   : > { %v789_v55 = vadd.f32 %v781_v49, %v701_v8  ;;  %v876_v9 = vadd.f32 %v867_v45, %v788_v51 }
 0x176   : > { %v783_v53 = vpop.f32.mrf.mxu0  ;;  %v871_v59 = vpop.f32.mrf.mxu1 }
 0x177   : > { %v790_v57 = vadd.f32 %v783_v53, %v702_v54  ;;  %v877_v61 = vadd.f32 %v869_v52, %v789_v55 }
 0x178   : > { %v785_v7 = vpop.f32.mrf.mxu0  ;;  %v873_v10 = vpop.f32.mrf.mxu1 }
 0x179   : > { %v791_v62 = vadd.f32 %v785_v7, %v703_v56  ;;  %v878_v3 = vadd.f32 %v871_v59, %v790_v57 }
 0x17a   : > { %v955_v60 = vpop.f32.mrf.mxu0 }
 0x17b   : > { %v964_v63 = vadd.f32 %v955_v60, %v876_v9  ;;  %v879_v12 = vadd.f32 %v873_v10, %v791_v62 }
 0x17c   : > { %v957_v1 = vpop.f32.mrf.mxu0 }
 0x17d   : > { %v980_v4 = vadd.f32 %v973_v58, %v964_v63  ;;  %v965_v5 = vadd.f32 %v957_v1, %v877_v61 }
 0x17e   : > { %v959_v11 = vpop.f32.mrf.mxu0 }
 0x17f   : > { %984 = vst [vmem:[%s190_s5] sm:$0xff] %v980_v4  ;;  %v981_v13 = vadd.f32 %v973_v58, %v965_v5  ;;  %v966_v14 = vadd.f32 %v959_v11, %v878_v3 }
 0x180   : > { %v961_v34 = vpop.f32.mrf.mxu0 }
 0x181   : > { %985 = vst [vmem:[%s190_s5 + $0x8] sm:$0xff] %v981_v13  ;;  %v982_v15 = vadd.f32 %v978_v6, %v966_v14  ;;  %v967_v16 = vadd.f32 %v961_v34, %v879_v12 }
 0x183   : > { %986 = vst [vmem:[%s190_s5 + $0x10] sm:$0xff] %v982_v15  ;;  %v983_v17 = vadd.f32 %v978_v6, %v967_v16 }
 0x185   : > { %987 = vst [vmem:[%s190_s5 + $0x18] sm:$0xff] %v983_v17 }
 0x186   : > { %1194 = shalt.err (!%p1191_p3)
}
 0x187   : > { %s1195_s22 = scalar_lea.hbm %s1526_s11, 512  ;;  %s1199_s28 = scalar_lea.hbm %s1575_s4, 1024 }
 0x188   : > { %p1196_p4 = scmp.ne.s32.totalorder %s1526_s11, %s1195_s22  ;;  %p1200_p9 = scmp.lt.s32.totalorder %s1526_s11, %s1575_s4 }
 0x189   : > { %p1201_p10 = scmp.lt.s32.totalorder %s1199_s28, %s1195_s22 }
 0x18a   : > { %p1197_p7 = pnand %p1196_p4, %p1318_p5 }
 0x18b   : > { %p1202_p11 = por %p1201_p10, %p1200_p9 }
 0x18c   : > { %p1198_p8 = pneg %p1197_p7 }
 0x18e   : > { %p1203_p12 = pnand %p1202_p11, %p1198_p8 }
 0x190   : > { %1206 = shalt.err (!%p1203_p12)
}
 0x191   : > { %s1254_s5 = smov 256  }
 0x192   : > { %1119 = dma.vmem_to_hbm [thread:$0]  (%p1318_p5), %s1521_s6, 512, %s1526_s11, %s1530_s12, %s1254_s5, %s1254_s5, %s1244_s7  }
 0x193 PF: > { %p1125_p13 = scmp.ge.s32.totalorder %s1241_s18, 2  ;;  %s1017_s8 = sand.u32 1, %s1229_s15  }
 0x194   : > { %s1018_s9 = scalar_lea.sflag [#allocation3], %s1017_s8 }
 0x195   : > { %p1122_p0 = pnand %p1125_p13, %p1322_p6 }
 0x197   : > { %p1123_p1 = pneg %p1122_p0 }
 0x199   : > { %1224 = dma.done.wait (%p1123_p1), %s1018_s9, 512  }
 0x19a   : > { %1226 = vsyncadd (%p1123_p1), %s1018_s9, 4294966784  ;;  %p14_p2 = scmp.ge.s32.totalorder %s1305_s21, 4   ;;  %s1578_s15 = smov %s1233_s16 }
 0x19b   : > { %s1579_s16 = smov %s1237_s17  ;;  %s1580_s17 = smov %s1316_s24 }
 0x19c   : > { %s1581_s18 = smov %s1305_s21  ;;  %16 = sbr.rel (!%p14_p2) target bundleno = 3 (0x3), region = 86 }
 0x1a1   :  { %1023 = vsyncpa [#allocation3], 1 }
 0x1a2   :  { %1025 = vsyncpa [#allocation3 + $0x1], 1 }

</bundles_post_ra>
